<compile_context>
chip_gen: v7x
topology: tpu7x:2x2x1
jax: 0.10.0
libtpu: 0.0.40
codegen_flags: <defaults>
</compile_context>

<pallas_src>
import math

import jax
import jax.numpy as jnp
from jax.experimental import pallas as pl
from jax.experimental.pallas import tpu as pltpu


def _copy_kernel(x_ref, o_ref):
    # Identity copy of one (tm, cols) tile through VMEM.
    o_ref[...] = x_ref[...]


def _device_kind() -> str:
    try:
        return jax.devices()[0].device_kind.lower()
    except Exception:
        return ""


def _sublane_multiple(itemsize: int) -> int:
    """Packed sublane count: f32 -> 8, bf16 -> 16, int8/fp8 -> 32."""
    return 8 * max(1, 4 // max(1, itemsize))


def _target_block_bytes(kind: str) -> int:
    """Per-block budget.  v5e's default scoped VMEM is 16 MiB -> keep 2 MiB
    blocks; v6e/v7x afford 4 MiB blocks (<= ~20 MiB in flight, under the
    32 MiB limit we request)."""
    if "v5" in kind:
        return 2 * 1024 * 1024
    return 4 * 1024 * 1024


def _lane_dense_shape(total: int, row_mult: int):
    """Factor `total` into (rows, cols) with cols a large multiple of 128 and
    rows a multiple of the packed sublane count when possible."""
    for cols in (2048, 1024, 512, 256, 128):
        if total % cols == 0 and (total // cols) % row_mult == 0:
            return total // cols, cols
    for cols in (2048, 1024, 512, 256, 128):
        if total % cols == 0:
            return total // cols, cols
    return None


def _pick_tile_rows(rows: int, cols: int, itemsize: int, row_mult: int,
                    target_bytes: int) -> int:
    """Largest row tile (multiple of row_mult, dividing rows when possible)
    whose block stays under target_bytes."""
    bytes_per_row = max(1, cols * itemsize)
    max_rows = max(1, target_bytes // bytes_per_row)
    if rows <= max_rows:
        return rows
    best = None
    tm = row_mult
    while tm <= max_rows:
        if rows % tm == 0:
            best = tm
        tm += row_mult
    if best is not None:
        return best
    # Non-dividing tile; Pallas handles the ragged last block.
    return max(row_mult, (max_rows // row_mult) * row_mult)


def _copy_call(x2, rows, cols, tm, itemsize, total, semantics, in_buffers):
    if in_buffers == 2:
        in_spec = pl.BlockSpec((tm, cols), lambda i: (i, 0))
    else:
        in_spec = pl.BlockSpec((tm, cols), lambda i: (i, 0),
                               pipeline_mode=pl.Buffered(in_buffers))
    return pl.pallas_call(
        _copy_kernel,
        out_shape=jax.ShapeDtypeStruct((rows, cols), x2.dtype),
        grid=(pl.cdiv(rows, tm),),
        in_specs=[in_spec],
        out_specs=pl.BlockSpec((tm, cols), lambda i: (i, 0)),
        # Identity copy: output reuses the input's HBM buffer.
        input_output_aliases={0: 0},
        cost_estimate=pl.CostEstimate(
            flops=0, transcendentals=0,
            bytes_accessed=2 * total * itemsize),
        compiler_params=pltpu.CompilerParams(
            dimension_semantics=semantics,
            vmem_limit_bytes=32 * 1024 * 1024),
    )(x2)


def flatten_pallas(x: jax.Array, full: bool = False, *,
                   min_kernel_bytes: int = 1 << 20) -> jax.Array:
    """Equivalent of Flatten(full).forward(x) for an NCHW (or any-rank) input."""
    n = x.shape[0]
    d = math.prod(x.shape[1:]) if x.ndim > 1 else 1
    total = math.prod(x.shape)
    itemsize = jnp.dtype(x.dtype).itemsize

    # Fast path: Flatten is pure metadata — for tiny activations the kernel
    # launch/step overhead dominates, so just reshape (== torch .view).
    if total * itemsize < min_kernel_bytes:
        return x.reshape(-1) if full else x.reshape(n, d)

    kind = _device_kind()
    row_mult = _sublane_multiple(itemsize)
    target_bytes = _target_block_bytes(kind)

    shape2d = _lane_dense_shape(total, row_mult)
    if shape2d is None:
        # total not divisible by 128: keep the full last dim (layout-legal)
        # but still tile rows so VMEM usage stays bounded and pipelined.
        rows, cols = n, d
    else:
        rows, cols = shape2d
    tm = _pick_tile_rows(rows, cols, itemsize, row_mult, target_bytes)

    # Glue: row-major collapse (== torch .view) — metadata-only in XLA.
    x2 = x.reshape(rows, cols)
    n_steps = pl.cdiv(rows, tm)

    is_v7 = ("v7" in kind) or ("tpu7" in kind)
    if is_v7:
        # v7x: shard the grid across both TensorCores and deepen the input
        # pipeline on long grids; fall back to the portable config on any
        # lowering issue.
        try:
            out = _copy_call(x2, rows, cols, tm, itemsize, total,
                             semantics=(pltpu.CORE_PARALLEL,),
                             in_buffers=3 if n_steps > 4 else 2)
        except Exception:
            out = _copy_call(x2, rows, cols, tm, itemsize, total,
                             semantics=("parallel",), in_buffers=2)
    else:
        out = _copy_call(x2, rows, cols, tm, itemsize, total,
                         semantics=("parallel",), in_buffers=2)

    # Final shapes are free metadata reshapes.
    return out.reshape(-1) if full else out.reshape(n, d)


if __name__ == "__main__":
    key = jax.random.PRNGKey(0)
    # Small NCHW input consistent with "end of a conv model" usage.
    x = jax.random.normal(key, (2, 4, 16, 16), dtype=jnp.float32)

    # Force the Pallas kernel path on the small example (both modes).
    y = flatten_pallas(x, full=False, min_kernel_bytes=0)
    jax.block_until_ready(y)
    assert y.shape == (2, 4 * 16 * 16) and y.dtype == x.dtype
    assert jnp.array_equal(y, x.reshape(x.shape[0], -1))

    z = flatten_pallas(x, full=True, min_kernel_bytes=0)
    jax.block_until_ready(z)
    assert z.shape == (2 * 4 * 16 * 16,)
    assert jnp.array_equal(z, x.reshape(-1))

    # Default (fast metadata) path on the tiny input.
    y_fast = flatten_pallas(x, full=False)
    jax.block_until_ready(y_fast)
    assert jnp.array_equal(y_fast, x.reshape(x.shape[0], -1))

    # Exercise the multi-step tiled path (8 MiB, f32).
    xl = jax.random.normal(jax.random.PRNGKey(1), (8, 64, 64, 64), dtype=jnp.float32)
    yl = flatten_pallas(xl, full=False)
    jax.block_until_ready(yl)
    assert jnp.array_equal(yl, xl.reshape(xl.shape[0], -1))

    # Exercise dtype-aware (bf16) sublane alignment.
    xb = jax.random.normal(jax.random.PRNGKey(2), (2, 8, 64, 64), dtype=jnp.bfloat16)
    yb = flatten_pallas(xb, full=False, min_kernel_bytes=0)
    jax.block_until_ready(yb)
    assert jnp.array_equal(yb, xb.reshape(xb.shape[0], -1))

    # Exercise the non-128-divisible fallback (rows tiled, full last dim).
    xo = jax.random.normal(jax.random.PRNGKey(3), (2, 3, 5, 7), dtype=jnp.float32)
    yo = flatten_pallas(xo, full=True, min_kernel_bytes=0)
    jax.block_until_ready(yo)
    assert jnp.array_equal(yo, xo.reshape(-1))

    print("KERNEL_OK")
</pallas_src>

<mosaic_0001>
module attributes {stable_mosaic.version = 11 : i64} {
  func.func @_copy_kernel(%arg0: i32, %arg1: memref<8x256xf32, #tpu.memory_space<vmem>>, %arg2: memref<8x256xf32, #tpu.memory_space<vmem>>) attributes {dimension_semantics = [#tpu.dimension_semantics<parallel>], iteration_bounds = array<i64: 1>, scalar_prefetch = 0 : i64, scratch_operands = 0 : i64, tpu.core_type = #tpu.core_type<tc>, window_params = [{transform_indices = @transform_0, window_bounds = array<i64: 8, 256>}, {transform_indices = @transform_1, window_bounds = array<i64: 8, 256>}]} {
    %c0 = arith.constant 0 : index
    %c0_0 = arith.constant 0 : index
    %0 = vector.load %arg1[%c0, %c0_0] : memref<8x256xf32, #tpu.memory_space<vmem>>, vector<8x256xf32>
    %c0_1 = arith.constant 0 : index
    %c0_2 = arith.constant 0 : index
    %1 = vector.load %arg2[%c0_1, %c0_2] : memref<8x256xf32, #tpu.memory_space<vmem>>, vector<8x256xf32>
    tpu.vector_store %arg2[%c0_1, %c0_2], %0 {strides = array<i32>} : memref<8x256xf32, #tpu.memory_space<vmem>>, vector<8x256xf32>,
    return
  }
  func.func @transform_0(%arg0: i32) -> (i32, i32) {
    %c0_i32 = arith.constant 0 : i32
    %c0_i32_0 = arith.constant 0 : i32
    return %arg0, %c0_i32 : i32, i32
  }
  func.func @transform_1(%arg0: i32) -> (i32, i32) {
    %c0_i32 = arith.constant 0 : i32
    %c0_i32_0 = arith.constant 0 : i32
    return %arg0, %c0_i32 : i32, i32
  }
}

</mosaic_0001>

<bundles_post_ra>
// kernel: tpu_custom_call.1
= control target key start
LH: loop header
LB: loop body
LE: loop exit
PB: predicated region body
PF: predicated region fallthrough
CT: control target
= control target key end

     0   :  { %6 = vsyncpa [#allocation3], 0  ;;  %s126_s0 = inlined_call_operand.hbm [shape: f32[8,256], index: 0, kind: input, shape index: {}, may-alias: {0,1}]   ;;  %s127_s1 = inlined_call_operand.hbm [shape: f32[8,256], index: 1, kind: output, shape index: {}, may-alias: {0,1}]  }
   0x1   :  { %7 = vsyncpa [#allocation4], 0  ;;  %s90_s6 = smov [#allocation2]   ;;  %s42_s10 = scalar_lea.hbm %s126_s0, 256 }
   0x2   :  { %s14_s7 = sshll.u32 %s90_s6, 4  ;;  %p43_p0 = scmp.ne.s32.totalorder %s126_s0, %s42_s10  ;;  %s15_s7 = int_to_ptr.vmem [resolvable:$true] %s14_s7 }
   0x3   :  { %p46_p1 = scmp.lt.u32.totalorder %s42_s10, %s126_s0 }
   0x5   :  { %p48_p2 = pnand %p46_p1, %p43_p0 }
   0x7   :  { %51 = shalt.err (!%p48_p2)
}
   0x8   :  { %s52_s15 = scalar_lea.vmem %s15_s7, 256  ;;  %p57_p4 = scmp.lt.s32.totalorder %s15_s7, %s15_s7 }
   0x9   :  { %p53_p3 = scmp.ne.s32.totalorder %s15_s7, %s52_s15  ;;  %p58_p5 = scmp.lt.s32.totalorder %s52_s15, %s52_s15 }
   0xb   :  { %p59_p6 = por %p58_p5, %p57_p4 }
   0xd   :  { %p60_p7 = pnand %p59_p6, %p53_p3 }
   0xf   :  { %63 = shalt.err (!%p60_p7)
}
  0x10   :  { %17 = dma.hbm_to_vmem [thread:$0]  %s126_s0, 256, %s15_s7, [#allocation3]  }
  0x11   :  { %86 = dma.done.wait [#allocation3], 256  }
  0x12   :  { %87 = vsyncadd [#allocation3], 4294967040  ;;  %s91_s18 = smov [#allocation5]   ;;  %v21_v0 = vld [vmem:[#allocation2] sm:$0xff]  ;;  %v22_v1 = vld [vmem:[#allocation2 + $0x8] sm:$0xff] }
  0x13   :  { %s31_s19 = sshll.u32 %s91_s18, 4  ;;  %23 = vst [vmem:[#allocation5] sm:$0xff] %v21_v0  ;;  %24 = vst [vmem:[#allocation5 + $0x8] sm:$0xff] %v22_v1  ;;  %s32_s19 = int_to_ptr.vmem [resolvable:$true] %s31_s19 }
  0x14   :  { %s64_s20 = scalar_lea.vmem %s32_s19, 256  ;;  %p69_p9 = scmp.lt.s32.totalorder %s32_s19, %s32_s19 }
  0x15   :  { %p65_p8 = scmp.ne.s32.totalorder %s32_s19, %s64_s20  ;;  %p70_p10 = scmp.lt.s32.totalorder %s64_s20, %s64_s20 }
  0x17   :  { %p71_p11 = por %p70_p10, %p69_p9 }
  0x19   :  { %p72_p12 = pnand %p71_p11, %p65_p8 }
  0x1b   :  { %75 = shalt.err (!%p72_p12)
}
  0x1c   :  { %s76_s0 = scalar_lea.hbm %s127_s1, 256 }
  0x1d   :  { %p77_p13 = scmp.ne.s32.totalorder %s127_s1, %s76_s0  ;;  %p80_p0 = scmp.lt.u32.totalorder %s76_s0, %s127_s1 }
  0x1f   :  { %p82_p1 = pnand %p80_p0, %p77_p13 }
  0x21   :  { %85 = shalt.err (!%p82_p1)
}
  0x22   :  { %34 = dma.vmem_to_hbm [thread:$0]  %s32_s19, 256, %s127_s1, [#allocation4]  }
  0x23   :  { %88 = dma.done.wait [#allocation4], 256  }
  0x24   :  { %89 = vsyncadd [#allocation4], 4294967040 }
  0x25   :  { %38 = vsyncpa [#allocation3], 1 }
  0x26   :  { %39 = vsyncpa [#allocation4], 1 }

</bundles_post_ra>
